<compile_context>
chip_gen: v5e
topology: v5e:2x2
jax: 0.10.0
libtpu: 0.0.40
codegen_flags: <defaults>
</compile_context>

<pallas_src>
import functools

import jax
import jax.numpy as jnp
from jax.experimental import pallas as pl
from jax.experimental.pallas import tpu as pltpu


_LANE = 128
_BLOCK_BUDGET_BYTES = 10 * 1024 * 1024   # per input block (double-buffered by Pallas)
_VMEM_LIMIT_BYTES = 40 * 1024 * 1024     # raised scoped-VMEM limit (v5e default is 16 MiB)
_FOLD_HW_MAX = 512                       # only fold for small spatial extents (XLU-bound regime)
_FOLD_LANES_MAX = 4096                   # keep folded lane width modest
_MXU_MIN_ROWS = 8                        # keep >= 8 folded rows so the matmul M dim is sane


def _sublane(dtype):
    return max(8, 32 // jnp.dtype(dtype).itemsize)


def _pick_fold(rows, hw, dtype):
    """Largest power-of-two fold factor k for the MXU-ones path (1 = disabled)."""
    dt = jnp.dtype(dtype)
    if hw > _FOLD_HW_MAX or dt.itemsize >= 4 or not jnp.issubdtype(dt, jnp.floating):
        return 1
    kmax = {2: 64, 1: 128}.get(dt.itemsize, 16)
    k = kmax
    while k >= 2:
        if rows % k == 0 and rows // k >= _MXU_MIN_ROWS and k * hw <= _FOLD_LANES_MAX:
            return k
        k //= 2
    return 1


def _pick_tile_rows(rows, lanes, dtype, *, budget_bytes=_BLOCK_BUDGET_BYTES, min_steps=4):
    """Row-tile size: fits the VMEM budget AND keeps >= min_steps grid steps."""
    itemsize = jnp.dtype(dtype).itemsize
    sub = _sublane(dtype)
    if rows <= sub:
        return rows                                   # one full-extent (possibly <8) block
    lanes_padded = pl.cdiv(lanes, _LANE) * _LANE      # real VMEM footprint incl. lane padding
    tile = budget_bytes // (lanes_padded * itemsize)
    tile = max(sub, (tile // sub) * sub)
    # Cap so the row grid has >= min_steps blocks: shards across v7x's 2 TCs
    # and keeps the HBM->VMEM DMA pipelined against the reduce.
    cap = max(sub, pl.cdiv(pl.cdiv(rows, min_steps), sub) * sub)
    tile = min(tile, cap)
    return min(tile, (rows // sub) * sub)


def _pick_hw_chunk(hw, dtype, *, budget_bytes=_BLOCK_BUDGET_BYTES):
    """hw chunk size; == hw when a full-hw block fits the budget (no masking)."""
    itemsize = jnp.dtype(dtype).itemsize
    sub = _sublane(dtype)
    hw_padded = pl.cdiv(hw, _LANE) * _LANE
    if hw_padded * itemsize * sub <= budget_bytes:
        return hw
    chunk = (budget_bytes // (sub * itemsize * _LANE)) * _LANE
    return max(_LANE, chunk)


# ---------------------------------------------------------------------------
# Kernels
# ---------------------------------------------------------------------------

def _gap_fold_kernel(x_ref, s_ref, o_ref, *, inv_hw):
    # x_ref: (TR, k*hw) folded tile; s_ref: (k*hw, k) block-diagonal ones.
    # The reduce runs entirely on the MXU with f32 accumulation.
    acc = jnp.dot(x_ref[...], s_ref[...], preferred_element_type=jnp.float32)
    o_ref[...] = (acc * inv_hw).astype(o_ref.dtype)


def _gap_sum_kernel(x_ref, o_ref, acc_ref, *, inv_hw, hw, hw_chunk, masked):
    # x_ref: (TR, hw_chunk) tile; acc_ref: (TR, 1) f32 scratch accumulator.
    j = pl.program_id(1)

    @pl.when(j == 0)
    def _():
        acc_ref[...] = jnp.zeros_like(acc_ref)

    x = x_ref[...]
    if masked:  # partial last hw chunk: zero out the out-of-bounds lanes
        col = jax.lax.broadcasted_iota(jnp.int32, x.shape, 1) + j * hw_chunk
        x = jnp.where(col < hw, x, jnp.zeros_like(x))
    acc_ref[...] += jnp.sum(x, axis=-1, dtype=jnp.float32, keepdims=True)

    @pl.when(j == pl.num_programs(1) - 1)
    def _():
        o_ref[...] = (acc_ref[...] * inv_hw).astype(o_ref.dtype)


# ---------------------------------------------------------------------------
# pallas_call wrappers
# ---------------------------------------------------------------------------

def _fold_call(x2, rows, hw, k, dtype, tile_rows):
    rows_f = rows // k
    lanes = k * hw
    xf = x2.reshape(rows_f, lanes)                      # contiguous fold of k rows into lanes
    sel = (jnp.arange(lanes, dtype=jnp.int32)[:, None] // hw
           == jnp.arange(k, dtype=jnp.int32)[None, :]).astype(dtype)

    tile = int(tile_rows) if tile_rows is not None else _pick_tile_rows(rows_f, lanes, dtype)
    tile = min(tile, rows_f) if rows_f <= _sublane(dtype) else tile
    itemsize = jnp.dtype(dtype).itemsize
    kernel = functools.partial(_gap_fold_kernel, inv_hw=1.0 / hw)

    out = pl.pallas_call(
        kernel,
        out_shape=jax.ShapeDtypeStruct((rows_f, k), dtype),
        grid=(pl.cdiv(rows_f, tile),),
        in_specs=[
            pl.BlockSpec((tile, lanes), lambda i: (i, 0)),
            pl.BlockSpec((lanes, k), lambda i: (0, 0)),   # ones matrix stays resident
        ],
        out_specs=pl.BlockSpec((tile, k), lambda i: (i, 0)),
        compiler_params=pltpu.CompilerParams(
            dimension_semantics=("parallel",),
            vmem_limit_bytes=_VMEM_LIMIT_BYTES,
        ),
        cost_estimate=pl.CostEstimate(
            flops=2 * rows * hw * k,
            bytes_accessed=rows * hw * itemsize + rows * itemsize,
            transcendentals=0,
        ),
    )(xf, sel)
    return out.reshape(rows, 1)


def _sum_call(x2, rows, hw, dtype, tile_rows, hw_chunk):
    if hw_chunk is None:
        hw_chunk = _pick_hw_chunk(hw, dtype)
    else:
        hw_chunk = int(hw_chunk)
        if hw_chunk < hw:  # chunks smaller than hw must be lane-aligned
            hw_chunk = max(_LANE, (hw_chunk // _LANE) * _LANE)
        hw_chunk = min(hw_chunk, hw)
    n_chunks = pl.cdiv(hw, hw_chunk)
    masked = (hw % hw_chunk) != 0

    tile = int(tile_rows) if tile_rows is not None else _pick_tile_rows(rows, hw_chunk, dtype)
    itemsize = jnp.dtype(dtype).itemsize
    kernel = functools.partial(_gap_sum_kernel, inv_hw=1.0 / hw, hw=hw,
                               hw_chunk=hw_chunk, masked=masked)

    out = pl.pallas_call(
        kernel,
        out_shape=jax.ShapeDtypeStruct((rows, 1), dtype),
        grid=(pl.cdiv(rows, tile), n_chunks),             # reduction (hw) axis last
        in_specs=[pl.BlockSpec((tile, hw_chunk), lambda i, j: (i, j))],
        out_specs=pl.BlockSpec((tile, 1), lambda i, j: (i, 0)),
        scratch_shapes=[pltpu.VMEM((tile, 1), jnp.float32)],
        compiler_params=pltpu.CompilerParams(
            dimension_semantics=("parallel", "arbitrary"),
            vmem_limit_bytes=_VMEM_LIMIT_BYTES,
        ),
        cost_estimate=pl.CostEstimate(
            flops=rows * hw,
            bytes_accessed=rows * hw * itemsize + rows * itemsize,
            transcendentals=0,
        ),
    )(x2)
    return out


def global_avg_pool2d(x, *, fold=None, tile_rows=None, hw_chunk=None):
    """Pallas equivalent of F.avg_pool2d(x, kernel_size=x.shape[2:]).

    x: (N, C, H, W)  ->  (N, C, 1, 1), same dtype.
    fold / tile_rows / hw_chunk are tuning / testing overrides (None = auto).
    """
    N, C, H, W = x.shape
    rows, hw = N * C, H * W
    x2 = x.reshape(rows, hw)                              # glue reshape in plain JAX

    k = _pick_fold(rows, hw, x.dtype) if fold is None else int(fold)
    if k > 1 and rows % k != 0:
        k = 1

    if k > 1:
        out = _fold_call(x2, rows, hw, k, x.dtype, tile_rows)
    else:
        out = _sum_call(x2, rows, hw, x.dtype, tile_rows, hw_chunk)
    return out.reshape(N, C, 1, 1)


if __name__ == "__main__":
    key = jax.random.PRNGKey(0)

    # 1) Small shape consistent with the module -> f32 row-sum path (single hw chunk).
    x = jax.random.normal(key, (2, 4, 16, 16), dtype=jnp.float32)
    y = global_avg_pool2d(x)
    jax.block_until_ready(y)
    y_ref = jnp.mean(x, axis=(2, 3), keepdims=True)
    assert y.shape == (2, 4, 1, 1) and y.dtype == x.dtype
    assert jnp.allclose(y, y_ref, atol=1e-5, rtol=1e-5)

    # 2) ResNet-style 7x7 head in bf16 -> MXU fold path (k=16, lanes=784).
    x2 = jax.random.normal(jax.random.PRNGKey(1), (2, 64, 7, 7), dtype=jnp.bfloat16)
    y2 = global_avg_pool2d(x2)
    jax.block_until_ready(y2)
    y2_ref = jnp.mean(x2.astype(jnp.float32), axis=(2, 3), keepdims=True)
    assert y2.shape == (2, 64, 1, 1) and y2.dtype == x2.dtype
    assert jnp.allclose(y2.astype(jnp.float32), y2_ref, atol=1e-2, rtol=1e-2)

    # 3) bf16 14x14 head with a small fold factor (k=2) -> fold path, partial tiles.
    x3 = jax.random.normal(jax.random.PRNGKey(2), (2, 8, 14, 14), dtype=jnp.bfloat16)
    y3 = global_avg_pool2d(x3)
    jax.block_until_ready(y3)
    y3_ref = jnp.mean(x3.astype(jnp.float32), axis=(2, 3), keepdims=True)
    assert jnp.allclose(y3.astype(jnp.float32), y3_ref, atol=1e-2, rtol=1e-2)

    # 4) Forced hw chunking, exact chunks (256 = 2 x 128) -> accumulator epilogue path.
    x4 = jax.random.normal(jax.random.PRNGKey(3), (2, 4, 16, 16), dtype=jnp.float32)
    y4 = global_avg_pool2d(x4, fold=1, hw_chunk=128)
    jax.block_until_ready(y4)
    assert jnp.allclose(y4, jnp.mean(x4, axis=(2, 3), keepdims=True), atol=1e-5, rtol=1e-5)

    # 5) Forced hw chunking with a masked partial last chunk (192 = 128 + 64).
    x5 = jax.random.normal(jax.random.PRNGKey(4), (2, 4, 12, 16), dtype=jnp.float32)
    y5 = global_avg_pool2d(x5, fold=1, hw_chunk=128)
    jax.block_until_ready(y5)
    assert jnp.allclose(y5, jnp.mean(x5, axis=(2, 3), keepdims=True), atol=1e-5, rtol=1e-5)

    # 6) f32 7x7 head (odd hw, lane-padded) on the row-sum path, multi-step row grid.
    x6 = jax.random.normal(jax.random.PRNGKey(5), (3, 8, 7, 7), dtype=jnp.float32)
    y6 = global_avg_pool2d(x6)
    jax.block_until_ready(y6)
    assert jnp.allclose(y6, jnp.mean(x6, axis=(2, 3), keepdims=True), atol=1e-5, rtol=1e-5)

    print("KERNEL_OK")
</pallas_src>

<mosaic_0001>
module attributes {stable_mosaic.version = 11 : i64} {
  func.func @_gap_sum_kernel(%arg0: i32, %arg1: i32, %arg2: memref<8x256xf32, #tpu.memory_space<vmem>>, %arg3: memref<8x1xf32, #tpu.memory_space<vmem>>, %arg4: memref<8x1xf32, #tpu.memory_space<vmem>>) attributes {dimension_semantics = [#tpu.dimension_semantics<parallel>, #tpu.dimension_semantics<arbitrary>], iteration_bounds = array<i64: 1, 1>, scalar_prefetch = 0 : i64, scratch_operands = 1 : i64, tpu.core_type = #tpu.core_type<tc>, window_params = [{transform_indices = @transform_0, window_bounds = array<i64: 8, 256>}, {transform_indices = @transform_1, window_bounds = array<i64: 8, 1>}]} {
    %c0_i32 = arith.constant 0 : i32
    %0 = arith.cmpi eq, %arg1, %c0_i32 : i32
    %1 = arith.extui %0 : i1 to i32
    %c0_i32_0 = arith.constant 0 : i32
    %2 = arith.cmpi ne, %1, %c0_i32_0 : i32
    scf.if %2 {
      %cst_8 = arith.constant 0.000000e+00 : f32
      %12 = vector.broadcast %cst_8 : f32 to vector<8x1xf32>
      %c0_9 = arith.constant 0 : index
      %c0_10 = arith.constant 0 : index
      %13 = vector.load %arg4[%c0_9, %c0_10] : memref<8x1xf32, #tpu.memory_space<vmem>>, vector<8x1xf32>
      tpu.vector_store %arg4[%c0_9, %c0_10], %12 {strides = array<i32>} : memref<8x1xf32, #tpu.memory_space<vmem>>, vector<8x1xf32>,
    } else {
    }
    %c0 = arith.constant 0 : index
    %c0_1 = arith.constant 0 : index
    %3 = vector.load %arg2[%c0, %c0_1] : memref<8x256xf32, #tpu.memory_space<vmem>>, vector<8x256xf32>
    %c0_2 = arith.constant 0 : index
    %c0_3 = arith.constant 0 : index
    %4 = vector.load %arg4[%c0_2, %c0_3] : memref<8x1xf32, #tpu.memory_space<vmem>>, vector<8x1xf32>
    %cst = arith.constant dense<0.000000e+00> : vector<8xf32>
    %5 = vector.multi_reduction <add>, %3, %cst [1] : vector<8x256xf32> to vector<8xf32>
    %6 = vector.shape_cast %5 : vector<8xf32> to vector<8x1xf32>
    %7 = arith.addf %4, %6 : vector<8x1xf32>
    %c0_4 = arith.constant 0 : index
    %c0_5 = arith.constant 0 : index
    %8 = vector.load %arg4[%c0_4, %c0_5] : memref<8x1xf32, #tpu.memory_space<vmem>>, vector<8x1xf32>
    tpu.vector_store %arg4[%c0_4, %c0_5], %7 {strides = array<i32>} : memref<8x1xf32, #tpu.memory_space<vmem>>, vector<8x1xf32>,
    %c0_i32_6 = arith.constant 0 : i32
    %9 = arith.cmpi eq, %arg1, %c0_i32_6 : i32
    %10 = arith.extui %9 : i1 to i32
    %c0_i32_7 = arith.constant 0 : i32
    %11 = arith.cmpi ne, %10, %c0_i32_7 : i32
    scf.if %11 {
      %c0_8 = arith.constant 0 : index
      %c0_9 = arith.constant 0 : index
      %12 = vector.load %arg4[%c0_8, %c0_9] : memref<8x1xf32, #tpu.memory_space<vmem>>, vector<8x1xf32>
      %cst_10 = arith.constant 3.906250e-03 : f32
      %13 = vector.broadcast %cst_10 : f32 to vector<8x1xf32>
      %14 = arith.mulf %12, %13 : vector<8x1xf32>
      %c0_11 = arith.constant 0 : index
      %c0_12 = arith.constant 0 : index
      %15 = vector.load %arg3[%c0_11, %c0_12] : memref<8x1xf32, #tpu.memory_space<vmem>>, vector<8x1xf32>
      tpu.vector_store %arg3[%c0_11, %c0_12], %14 {strides = array<i32>} : memref<8x1xf32, #tpu.memory_space<vmem>>, vector<8x1xf32>,
    } else {
    }
    return
  }
  func.func @transform_0(%arg0: i32, %arg1: i32) -> (i32, i32) {
    %c0_i32 = arith.constant 0 : i32
    return %arg0, %arg1 : i32, i32
  }
  func.func @transform_1(%arg0: i32, %arg1: i32) -> (i32, i32) {
    %c0_i32 = arith.constant 0 : i32
    %c0_i32_0 = arith.constant 0 : i32
    return %arg0, %c0_i32 : i32, i32
  }
}

</mosaic_0001>

<bundles_post_ra>
// kernel: tpu_custom_call.1
= control target key start
LH: loop header
LB: loop body
LE: loop exit
PB: predicated region body
PF: predicated region fallthrough
CT: control target
= control target key end

     0   :  { %6 = vsyncpa [#allocation4], 0  ;;  %s76_s9 = smov [#allocation3]   ;;  %s94_s0 = inlined_call_operand.hbm [shape: f32[8,256], index: 0, kind: input, shape index: {}]   ;;  %s95_s1 = inlined_call_operand.vmem [shape: f32[8,1], index: 1, kind: output, shape index: {}]  }
   0x1   :  { %s12_s8 = sshll.u32 %s94_s0, 4  ;;  %s14_s10 = sshll.u32 %s76_s9, 4  ;;  %s13_s8 = int_to_ptr.hbm [resolvable:$true] %s12_s8  ;;  %s15_s10 = int_to_ptr.vmem [resolvable:$true] %s14_s10 }
   0x2   :  { %17 = dma.hbm_to_vmem [thread:$0]  %s13_s8, 256, %s15_s10, [#allocation4]  }
   0x3   :  { %74 = dma.done.wait [#allocation4], 256  }
   0x4   :  { %75 = vsyncadd [#allocation4], 4294967040  ;;  %vm26_vm0 = vcmask 7168   ;;  %v77_v0 = vmov 0.0   ;;  %v28_v1 = vld [vmem:[#allocation3] sm:$0xff]  ;;  %v29_v2 = vld [vmem:[#allocation3 + $0x8] sm:$0xff] }
   0x5   :  { %27 = vst.msk [vmem:[#allocation2] sm:$0xff] %vm26_vm0, %v77_v0  ;;  %v31_v3 = vadd.f32 %v29_v2, %v28_v1 }
   0x7   :  { %32 = vadd.xlane.f32.xlu0 %v31_v3 }
   0xc   :  { %v30_v4 = vld [vmem:[#allocation2] sm:$0xff] }
  0x7a   :  { %v33_v5 = vpop.xlane.xlu0 %32 }
  0x7b   :  { %v34_v6 = vadd.f32 %v33_v5, %v30_v4 }
  0x7d   :  { %36 = vst.msk [vmem:[#allocation2] sm:$0xff] %vm26_vm0, %v34_v6 }
  0x84   :  { %v40_v7 = vld [vmem:[#allocation2] sm:$0xff] }
  0x85   :  { %v41_v8 = vmul.f32 0.00390625, %v40_v7 }
  0x87   :  { %42 = vst.msk [vmem:[%s95_s1] sm:$0xff] %vm26_vm0, %v41_v8 }
  0x88   :  { %47 = vsyncpa [#allocation4], 1 }

</bundles_post_ra>
